<compile_context>
chip_gen: v7x
topology: tpu7x:2x2x1
jax: 0.10.0
libtpu: 0.0.40
codegen_flags: <defaults>
</compile_context>

<pallas_src>
import jax
import jax.numpy as jnp
from jax.experimental import pallas as pl
from jax.experimental.pallas import tpu as pltpu

# module hyper-parameters (defaults of HandDecoder_nerf2d)
C0, C1, C2 = 64, 32, 16
L = 10
PE = 3 * 2 * L            # 60
DIN = C0 + PE             # 124
KH1, KH2 = 8, 16          # hidden widths of continuous_kernel1


def _dot(a, b):
    # DEFAULT precision: bf16 MXU passes with f32 accumulation.
    return jnp.dot(a, b, preferred_element_type=jnp.float32)


def _hand_decoder_kernel(
    f_ref, peco_ref, c24_ref,
    w1f_ref, w1p_ref, b1_ref, w2_ref, b2_ref, w3_ref, b3_ref,
    wk1_ref, wk1blk_ref, bk1t_ref, wk2p_ref, bk2p_ref,
    w2g_ref, bk3m_ref,
    out_ref,
):
    Bt, P, _ = peco_ref.shape
    R1 = Bt * P

    f = f_ref[...].reshape(Bt, C0)                      # (Bt, 64)
    peco = peco_ref[...]                                # (Bt, P, 63)  [pe | coords]
    c24 = c24_ref[...].reshape(Bt, 3 * P)               # (Bt, 3P) lane-packed coords

    # ---------------- stage 1: decode_mlp + relu ----------------
    fz = _dot(f, w1f_ref[...])                                              # (Bt, 32)
    pz = _dot(peco.reshape(R1, PE + 3), w1p_ref[...]).reshape(Bt, P, 32)    # coord lanes hit zero rows
    h = jnp.maximum(pz + fz[:, None, :] + b1_ref[...], 0.0).reshape(R1, 32)
    h = jnp.maximum(_dot(h, w2_ref[...]) + b2_ref[...], 0.0)                # (R1, 16)
    feat = jnp.maximum(_dot(h, w3_ref[...]) + b3_ref[...], 0.0)             # (R1, C1)

    # G[(b,p), e*C2+d] = sum_c feat[b,p,c] * wk3[e, c*C2+d]
    g = _dot(feat, w2g_ref[...]).reshape(Bt, P, KH2 * C2)                   # (Bt, P, 256)
    # Gpk[b, e*P+p, d] = G[b,p,e,d]  — 16 static lane slices, one sublane concat
    gpk = jnp.concatenate(
        [g[:, :, e * C2:(e + 1) * C2] for e in range(KH2)], axis=1)         # (Bt, KH2*P, C2)
    # bias: (sum_p feat[b,p,:]) @ bk3m  (reduce on 32 lanes before the matmul)
    fb = _dot(feat.reshape(Bt, P, C1).sum(axis=1), bk3m_ref[...])           # (Bt, C2)

    # ---------------- stage 2: continuous kernel, (p,e) packed in lanes ----------------
    co = peco[:, :, PE:].reshape(R1, 3)                                     # rows (b, j)
    cw = _dot(co, wk1_ref[...]).reshape(Bt, P, KH1)                         # cw[b,j,c]
    cwtile = jnp.concatenate([cw] * P, axis=-1)                             # (Bt, Pj, 8P): lanes p*8+c -> cw[b,j,c]
    cwflat = _dot(c24, wk1blk_ref[...])                                     # (Bt, 8P):     lanes p*8+c -> cw[b,p,c]
    # h1[b,j, p*8+c] = relu((coords[b,p]-coords[b,j]) @ wk1 + bk1)[c]
    h1 = jnp.maximum(cwflat[:, None, :] - cwtile + bk1t_ref[...], 0.0)      # (Bt, Pj, 8P)
    # h2[b,j, e*P+p] = relu(h1[b,j,p,:] @ wk2 + bk2)[e]  (block-diagonal, column-permuted)
    h2 = jnp.maximum(_dot(h1.reshape(R1, KH1 * P), wk2p_ref[...]) + bk2p_ref[...], 0.0)  # (R1, 16P)

    # out[b,j,d] = relu( sum_{p,e} h2[b,j,p,e] * G[b,p,e,d] + fb[b,d] )
    psum = jnp.einsum('bjk,bkd->bjd', h2.reshape(Bt, P, KH2 * P), gpk,
                      preferred_element_type=jnp.float32)                   # (Bt, Pj, C2)
    out3 = jnp.maximum(psum + fb[:, None, :], 0.0)                          # (Bt, Pj, C2)
    # lane-dense (Bt, 1, P*C2) slab: lanes j*C2+d
    out_ref[...] = jnp.concatenate([out3[:, j:j + 1, :] for j in range(P)], axis=-1)


def _vmem_limit_bytes():
    cap = None
    try:
        cap = int(pltpu.get_tpu_info().vmem_capacity_bytes)
    except Exception:
        cap = None
    if not cap:
        cap = 64 * 1024 * 1024
    # leave headroom on 64 MiB chips (v7x); cap at 48 MiB on 128 MiB chips
    return min(cap // 2, 48 * 1024 * 1024)


def hand_decoder_nerf2d(params, feature, coords_pe, coords, block_b=64):
    B, P, _ = coords_pe.shape
    (w1, b1, w2, b2, w3, b3, wk1, bk1, wk2, bk2, wk3, bk3) = params

    # ---- batch blocking: never shrink small batches; only split when every
    # ---- grid step still feeds >= 256 rows (lets v7x use both TensorCores) ----
    if B >= 64:
        Bt = min(block_b, pl.cdiv(B, 2))
    else:
        Bt = min(block_b, B)
    Bpad = pl.cdiv(B, Bt) * Bt
    if Bpad != B:
        pad = Bpad - B
        feature = jnp.pad(feature, ((0, pad), (0, 0)))
        coords_pe = jnp.pad(coords_pe, ((0, pad), (0, 0), (0, 0)))
        coords = jnp.pad(coords, ((0, pad), (0, 0), (0, 0)))

    feature3 = feature.reshape(Bpad, 1, C0)                       # batch stays out of tiled dims
    pe_co = jnp.concatenate([coords_pe, coords], axis=-1)         # (Bpad, P, 63)
    coords24 = coords.reshape(Bpad, 1, 3 * P)                     # (Bpad, 1, 3P) lane-packed

    # ---- host-side weight re-layouts (exact, done once) ----
    w1f = w1[:C0, :]                                              # (64, 32)
    w1pc = jnp.concatenate([w1[C0:, :],
                            jnp.zeros((3, w1.shape[1]), w1.dtype)], axis=0)   # (63, 32)
    eyeP = jnp.eye(P, dtype=jnp.float32)
    wk1blk = jnp.kron(eyeP, wk1)                                  # (3P, 8P): [p*3+k, p*8+c]
    bk1t = jnp.tile(bk1, (1, P))                                  # (1, 8P):  lane p*8+c -> bk1[c]
    wk2blk = jnp.kron(eyeP, wk2)                                  # (8P, 16P): cols p*16+e
    wk2p = wk2blk.reshape(KH1 * P, P, KH2).transpose(0, 2, 1).reshape(KH1 * P, KH2 * P)  # cols e*P+p
    bk2p = jnp.repeat(bk2, P, axis=1)                             # (1, 16P): lane e*P+p -> bk2[e]
    w2g = wk3.reshape(KH2, C1, C2).transpose(1, 0, 2).reshape(C1, KH2 * C2)   # (32, 256)
    bk3m = bk3.reshape(C1, C2)                                    # (32, 16)

    weight_args = [w1f, w1pc, b1, w2, b2, w3, b3,
                   wk1, wk1blk, bk1t, wk2p, bk2p, w2g, bk3m]

    def _full_spec(a):
        n = a.ndim
        return pl.BlockSpec(a.shape, lambda b, _n=n: (0,) * _n)

    in_specs = [
        pl.BlockSpec((Bt, 1, C0), lambda b: (b, 0, 0)),
        pl.BlockSpec((Bt, P, PE + 3), lambda b: (b, 0, 0)),
        pl.BlockSpec((Bt, 1, 3 * P), lambda b: (b, 0, 0)),
    ] + [_full_spec(w) for w in weight_args]

    # ---- advisory cost estimate ----
    r1 = Bpad * P
    macs = (Bpad * C0 * 32 + r1 * (PE + 3) * 32 + r1 * 32 * 16 + r1 * 16 * C1   # decode_mlp
            + r1 * C1 * (KH2 * C2) + Bpad * C1 * C2                             # G, bias
            + r1 * 3 * KH1 + Bpad * (3 * P) * (KH1 * P)                         # cw, cwflat
            + r1 * (KH1 * P) * (KH2 * P)                                        # block-diag wk2
            + Bpad * P * (KH2 * P) * C2)                                        # final contraction
    flops = 2 * macs + r1 * (32 + 16 + C1 + KH1 * P + KH2 * P) + Bpad * P * C2
    bytes_accessed = 4 * (int(feature3.size) + int(pe_co.size) + int(coords24.size)
                          + sum(int(w.size) for w in weight_args) + Bpad * P * C2)
    cost = pl.CostEstimate(flops=int(flops), transcendentals=0,
                           bytes_accessed=int(bytes_accessed))

    out = pl.pallas_call(
        _hand_decoder_kernel,
        out_shape=jax.ShapeDtypeStruct((Bpad, 1, P * C2), jnp.float32),
        grid=(Bpad // Bt,),
        in_specs=in_specs,
        out_specs=pl.BlockSpec((Bt, 1, P * C2), lambda b: (b, 0, 0)),
        compiler_params=pltpu.CompilerParams(
            dimension_semantics=("parallel",),
            vmem_limit_bytes=_vmem_limit_bytes()),
        cost_estimate=cost,
    )(feature3, pe_co, coords24, *weight_args)

    out = out.reshape(Bpad, P, C2)
    if Bpad != B:
        out = out[:B]
    return out


# ---------------- deterministic parameter init (PyTorch Linear-style uniform) ----------------
def init_params(key):
    def linear(k, fan_in, fan_out):
        kw, kb = jax.random.split(k)
        bound = 1.0 / float(fan_in) ** 0.5
        w = jax.random.uniform(kw, (fan_in, fan_out), jnp.float32, -bound, bound)
        b = jax.random.uniform(kb, (1, fan_out), jnp.float32, -bound, bound)
        return w, b

    keys = jax.random.split(key, 6)
    w1, b1 = linear(keys[0], DIN, 32)
    w2, b2 = linear(keys[1], 32, 16)
    w3, b3 = linear(keys[2], 16, C1)
    wk1, bk1 = linear(keys[3], 3, KH1)
    wk2, bk2 = linear(keys[4], KH1, KH2)
    wk3, bk3 = linear(keys[5], KH2, C1 * C2)
    return (w1, b1, w2, b2, w3, b3, wk1, bk1, wk2, bk2, wk3, bk3)


# ---------------- pure-JAX reference mirroring the PyTorch forward ----------------
def reference_forward(params, feature, coords_pe, coords):
    (w1, b1, w2, b2, w3, b3, wk1, bk1, wk2, bk2, wk3, bk3) = params
    B, P, _ = coords_pe.shape
    relu = jax.nn.relu
    patches = []
    for p in range(P):
        x = jnp.concatenate([feature, coords_pe[:, p, :]], axis=1)
        x = relu(x @ w1 + b1[0])
        x = relu(x @ w2 + b2[0])
        x = x @ w3 + b3[0]
        patches.append(relu(x))
    feat = jnp.stack(patches, axis=1)                       # (B, P, C1)
    nodes = []
    for j in range(P):
        rr = (coords - coords[:, j, :][:, None, :]).reshape(-1, 3)
        k = relu(rr @ wk1 + bk1[0])
        k = relu(k @ wk2 + bk2[0])
        k = k @ wk3 + bk3[0]
        kmat = k.reshape(-1, C1, C2)
        x = jnp.einsum('nc,ncd->nd', feat.reshape(-1, C1), kmat)
        x = relu(x.reshape(B, P, C2).sum(axis=1))
        nodes.append(x)
    return jnp.stack(nodes, axis=1)                         # (B, P, C2)


if __name__ == "__main__":
    key = jax.random.PRNGKey(0)
    kp, kf, kpe, kc = jax.random.split(key, 4)
    B, P = 2, 8

    params = init_params(kp)
    feature = jax.random.normal(kf, (B, C0), jnp.float32)
    coords_pe = jax.random.normal(kpe, (B, P, PE), jnp.float32)
    coords = jax.random.normal(kc, (B, P, 3), jnp.float32)

    fwd = jax.jit(hand_decoder_nerf2d)
    out = jax.block_until_ready(fwd(params, feature, coords_pe, coords))
    assert out.shape == (B, P, C2)

    with jax.default_matmul_precision("float32"):
        ref = reference_forward(params, feature, coords_pe, coords)
    max_err = float(jnp.max(jnp.abs(out - ref)))
    if max_err > 2e-2:
        raise AssertionError(f"kernel/reference mismatch: max abs err = {max_err}")

    print("KERNEL_OK")
</pallas_src>

<mosaic_0001>
module attributes {stable_mosaic.version = 11 : i64} {
  func.func @_hand_decoder_kernel(%arg0: i32, %arg1: memref<2x1x64xf32, #tpu.memory_space<vmem>>, %arg2: memref<2x8x63xf32, #tpu.memory_space<vmem>>, %arg3: memref<2x1x24xf32, #tpu.memory_space<vmem>>, %arg4: memref<64x32xf32, #tpu.memory_space<vmem>>, %arg5: memref<63x32xf32, #tpu.memory_space<vmem>>, %arg6: memref<1x32xf32, #tpu.memory_space<vmem>>, %arg7: memref<32x16xf32, #tpu.memory_space<vmem>>, %arg8: memref<1x16xf32, #tpu.memory_space<vmem>>, %arg9: memref<16x32xf32, #tpu.memory_space<vmem>>, %arg10: memref<1x32xf32, #tpu.memory_space<vmem>>, %arg11: memref<3x8xf32, #tpu.memory_space<vmem>>, %arg12: memref<24x64xf32, #tpu.memory_space<vmem>>, %arg13: memref<1x64xf32, #tpu.memory_space<vmem>>, %arg14: memref<64x128xf32, #tpu.memory_space<vmem>>, %arg15: memref<1x128xf32, #tpu.memory_space<vmem>>, %arg16: memref<32x256xf32, #tpu.memory_space<vmem>>, %arg17: memref<32x16xf32, #tpu.memory_space<vmem>>, %arg18: memref<2x1x128xf32, #tpu.memory_space<vmem>>) attributes {dimension_semantics = [#tpu.dimension_semantics<parallel>], iteration_bounds = array<i64: 1>, scalar_prefetch = 0 : i64, scratch_operands = 0 : i64, tpu.core_type = #tpu.core_type<tc>, window_params = [{transform_indices = @transform_0, window_bounds = array<i64: 2, 1, 64>}, {transform_indices = @transform_1, window_bounds = array<i64: 2, 8, 63>}, {transform_indices = @transform_2, window_bounds = array<i64: 2, 1, 24>}, {pipeline_mode = #tpu.pipeline_mode<synchronous>, transform_indices = @transform_3, window_bounds = array<i64: 64, 32>}, {pipeline_mode = #tpu.pipeline_mode<synchronous>, transform_indices = @transform_4, window_bounds = array<i64: 63, 32>}, {pipeline_mode = #tpu.pipeline_mode<synchronous>, transform_indices = @transform_5, window_bounds = array<i64: 1, 32>}, {pipeline_mode = #tpu.pipeline_mode<synchronous>, transform_indices = @transform_6, window_bounds = array<i64: 32, 16>}, {pipeline_mode = #tpu.pipeline_mode<synchronous>, transform_indices = @transform_7, window_bounds = array<i64: 1, 16>}, {pipeline_mode = #tpu.pipeline_mode<synchronous>, transform_indices = @transform_8, window_bounds = array<i64: 16, 32>}, {pipeline_mode = #tpu.pipeline_mode<synchronous>, transform_indices = @transform_9, window_bounds = array<i64: 1, 32>}, {pipeline_mode = #tpu.pipeline_mode<synchronous>, transform_indices = @transform_10, window_bounds = array<i64: 3, 8>}, {pipeline_mode = #tpu.pipeline_mode<synchronous>, transform_indices = @transform_11, window_bounds = array<i64: 24, 64>}, {pipeline_mode = #tpu.pipeline_mode<synchronous>, transform_indices = @transform_12, window_bounds = array<i64: 1, 64>}, {pipeline_mode = #tpu.pipeline_mode<synchronous>, transform_indices = @transform_13, window_bounds = array<i64: 64, 128>}, {pipeline_mode = #tpu.pipeline_mode<synchronous>, transform_indices = @transform_14, window_bounds = array<i64: 1, 128>}, {pipeline_mode = #tpu.pipeline_mode<synchronous>, transform_indices = @transform_15, window_bounds = array<i64: 32, 256>}, {pipeline_mode = #tpu.pipeline_mode<synchronous>, transform_indices = @transform_16, window_bounds = array<i64: 32, 16>}, {transform_indices = @transform_17, window_bounds = array<i64: 2, 1, 128>}]} {
    %c0 = arith.constant 0 : index
    %c0_0 = arith.constant 0 : index
    %c0_1 = arith.constant 0 : index
    %0 = vector.load %arg1[%c0, %c0_0, %c0_1] : memref<2x1x64xf32, #tpu.memory_space<vmem>>, vector<2x1x64xf32>
    %1 = vector.shape_cast %0 : vector<2x1x64xf32> to vector<2x64xf32>
    %c0_2 = arith.constant 0 : index
    %c0_3 = arith.constant 0 : index
    %c0_4 = arith.constant 0 : index
    %2 = vector.load %arg2[%c0_2, %c0_3, %c0_4] : memref<2x8x63xf32, #tpu.memory_space<vmem>>, vector<2x8x63xf32>
    %c0_5 = arith.constant 0 : index
    %c0_6 = arith.constant 0 : index
    %c0_7 = arith.constant 0 : index
    %3 = vector.load %arg3[%c0_5, %c0_6, %c0_7] : memref<2x1x24xf32, #tpu.memory_space<vmem>>, vector<2x1x24xf32>
    %4 = vector.shape_cast %3 : vector<2x1x24xf32> to vector<2x24xf32>
    %c0_8 = arith.constant 0 : index
    %c0_9 = arith.constant 0 : index
    %5 = vector.load %arg4[%c0_8, %c0_9] : memref<64x32xf32, #tpu.memory_space<vmem>>, vector<64x32xf32>
    %cst = arith.constant dense<0.000000e+00> : vector<2x32xf32>
    %6 = tpu.matmul %1, %5, %cst {dimension_numbers = #tpu.dot_dimension_numbers<[1], [0], [0], [1], [0, 0, 1, 1], [], []>} : vector<2x64xf32>, vector<64x32xf32>, vector<2x32xf32> -> vector<2x32xf32>
    %7 = vector.shape_cast %2 : vector<2x8x63xf32> to vector<16x63xf32>
    %c0_10 = arith.constant 0 : index
    %c0_11 = arith.constant 0 : index
    %8 = vector.load %arg5[%c0_10, %c0_11] : memref<63x32xf32, #tpu.memory_space<vmem>>, vector<63x32xf32>
    %cst_12 = arith.constant dense<0.000000e+00> : vector<16x32xf32>
    %9 = tpu.matmul %7, %8, %cst_12 {dimension_numbers = #tpu.dot_dimension_numbers<[1], [0], [0], [1], [0, 0, 1, 1], [], []>} : vector<16x63xf32>, vector<63x32xf32>, vector<16x32xf32> -> vector<16x32xf32>
    %10 = vector.shape_cast %9 : vector<16x32xf32> to vector<2x8x32xf32>
    %11 = vector.shape_cast %6 : vector<2x32xf32> to vector<2x1x32xf32>
    %12 = vector.broadcast %11 : vector<2x1x32xf32> to vector<2x8x32xf32>
    %13 = arith.addf %10, %12 : vector<2x8x32xf32>
    %c0_13 = arith.constant 0 : index
    %c0_14 = arith.constant 0 : index
    %14 = vector.load %arg6[%c0_13, %c0_14] : memref<1x32xf32, #tpu.memory_space<vmem>>, vector<1x32xf32>
    %15 = vector.shape_cast %14 : vector<1x32xf32> to vector<1x1x32xf32>
    %16 = vector.broadcast %15 : vector<1x1x32xf32> to vector<2x8x32xf32>
    %17 = arith.addf %13, %16 : vector<2x8x32xf32>
    %cst_15 = arith.constant 0.000000e+00 : f32
    %18 = vector.broadcast %cst_15 : f32 to vector<2x8x32xf32>
    %19 = arith.maximumf %17, %18 : vector<2x8x32xf32>
    %20 = vector.shape_cast %19 : vector<2x8x32xf32> to vector<16x32xf32>
    %c0_16 = arith.constant 0 : index
    %c0_17 = arith.constant 0 : index
    %21 = vector.load %arg7[%c0_16, %c0_17] : memref<32x16xf32, #tpu.memory_space<vmem>>, vector<32x16xf32>
    %cst_18 = arith.constant dense<0.000000e+00> : vector<16x16xf32>
    %22 = tpu.matmul %20, %21, %cst_18 {dimension_numbers = #tpu.dot_dimension_numbers<[1], [0], [0], [1], [0, 0, 1, 1], [], []>} : vector<16x32xf32>, vector<32x16xf32>, vector<16x16xf32> -> vector<16x16xf32>
    %c0_19 = arith.constant 0 : index
    %c0_20 = arith.constant 0 : index
    %23 = vector.load %arg8[%c0_19, %c0_20] : memref<1x16xf32, #tpu.memory_space<vmem>>, vector<1x16xf32>
    %24 = vector.broadcast %23 : vector<1x16xf32> to vector<16x16xf32>
    %25 = arith.addf %22, %24 : vector<16x16xf32>
    %cst_21 = arith.constant 0.000000e+00 : f32
    %26 = vector.broadcast %cst_21 : f32 to vector<16x16xf32>
    %27 = arith.maximumf %25, %26 : vector<16x16xf32>
    %c0_22 = arith.constant 0 : index
    %c0_23 = arith.constant 0 : index
    %28 = vector.load %arg9[%c0_22, %c0_23] : memref<16x32xf32, #tpu.memory_space<vmem>>, vector<16x32xf32>
    %cst_24 = arith.constant dense<0.000000e+00> : vector<16x32xf32>
    %29 = tpu.matmul %27, %28, %cst_24 {dimension_numbers = #tpu.dot_dimension_numbers<[1], [0], [0], [1], [0, 0, 1, 1], [], []>} : vector<16x16xf32>, vector<16x32xf32>, vector<16x32xf32> -> vector<16x32xf32>
    %c0_25 = arith.constant 0 : index
    %c0_26 = arith.constant 0 : index
    %30 = vector.load %arg10[%c0_25, %c0_26] : memref<1x32xf32, #tpu.memory_space<vmem>>, vector<1x32xf32>
    %31 = vector.broadcast %30 : vector<1x32xf32> to vector<16x32xf32>
    %32 = arith.addf %29, %31 : vector<16x32xf32>
    %cst_27 = arith.constant 0.000000e+00 : f32
    %33 = vector.broadcast %cst_27 : f32 to vector<16x32xf32>
    %34 = arith.maximumf %32, %33 : vector<16x32xf32>
    %c0_28 = arith.constant 0 : index
    %c0_29 = arith.constant 0 : index
    %35 = vector.load %arg16[%c0_28, %c0_29] : memref<32x256xf32, #tpu.memory_space<vmem>>, vector<32x256xf32>
    %cst_30 = arith.constant dense<0.000000e+00> : vector<16x256xf32>
    %36 = tpu.matmul %34, %35, %cst_30 {dimension_numbers = #tpu.dot_dimension_numbers<[1], [0], [0], [1], [0, 0, 1, 1], [], []>} : vector<16x32xf32>, vector<32x256xf32>, vector<16x256xf32> -> vector<16x256xf32>
    %37 = vector.shape_cast %36 : vector<16x256xf32> to vector<2x8x256xf32>
    %38 = vector.extract_strided_slice %37 {offsets = [0, 0, 0], sizes = [2, 8, 16], strides = [1, 1, 1]} : vector<2x8x256xf32> to vector<2x8x16xf32>
    %39 = vector.extract_strided_slice %37 {offsets = [0, 0, 16], sizes = [2, 8, 16], strides = [1, 1, 1]} : vector<2x8x256xf32> to vector<2x8x16xf32>
    %40 = vector.extract_strided_slice %37 {offsets = [0, 0, 32], sizes = [2, 8, 16], strides = [1, 1, 1]} : vector<2x8x256xf32> to vector<2x8x16xf32>
    %41 = vector.extract_strided_slice %37 {offsets = [0, 0, 48], sizes = [2, 8, 16], strides = [1, 1, 1]} : vector<2x8x256xf32> to vector<2x8x16xf32>
    %42 = vector.extract_strided_slice %37 {offsets = [0, 0, 64], sizes = [2, 8, 16], strides = [1, 1, 1]} : vector<2x8x256xf32> to vector<2x8x16xf32>
    %43 = vector.extract_strided_slice %37 {offsets = [0, 0, 80], sizes = [2, 8, 16], strides = [1, 1, 1]} : vector<2x8x256xf32> to vector<2x8x16xf32>
    %44 = vector.extract_strided_slice %37 {offsets = [0, 0, 96], sizes = [2, 8, 16], strides = [1, 1, 1]} : vector<2x8x256xf32> to vector<2x8x16xf32>
    %45 = vector.extract_strided_slice %37 {offsets = [0, 0, 112], sizes = [2, 8, 16], strides = [1, 1, 1]} : vector<2x8x256xf32> to vector<2x8x16xf32>
    %46 = vector.extract_strided_slice %37 {offsets = [0, 0, 128], sizes = [2, 8, 16], strides = [1, 1, 1]} : vector<2x8x256xf32> to vector<2x8x16xf32>
    %47 = vector.extract_strided_slice %37 {offsets = [0, 0, 144], sizes = [2, 8, 16], strides = [1, 1, 1]} : vector<2x8x256xf32> to vector<2x8x16xf32>
    %48 = vector.extract_strided_slice %37 {offsets = [0, 0, 160], sizes = [2, 8, 16], strides = [1, 1, 1]} : vector<2x8x256xf32> to vector<2x8x16xf32>
    %49 = vector.extract_strided_slice %37 {offsets = [0, 0, 176], sizes = [2, 8, 16], strides = [1, 1, 1]} : vector<2x8x256xf32> to vector<2x8x16xf32>
    %50 = vector.extract_strided_slice %37 {offsets = [0, 0, 192], sizes = [2, 8, 16], strides = [1, 1, 1]} : vector<2x8x256xf32> to vector<2x8x16xf32>
    %51 = vector.extract_strided_slice %37 {offsets = [0, 0, 208], sizes = [2, 8, 16], strides = [1, 1, 1]} : vector<2x8x256xf32> to vector<2x8x16xf32>
    %52 = vector.extract_strided_slice %37 {offsets = [0, 0, 224], sizes = [2, 8, 16], strides = [1, 1, 1]} : vector<2x8x256xf32> to vector<2x8x16xf32>
    %53 = vector.extract_strided_slice %37 {offsets = [0, 0, 240], sizes = [2, 8, 16], strides = [1, 1, 1]} : vector<2x8x256xf32> to vector<2x8x16xf32>
    %54 = tpu.concatenate %38, %39, %40, %41, %42, %43, %44, %45, %46, %47, %48, %49, %50, %51, %52, %53 in 1 : vector<2x8x16xf32>, vector<2x8x16xf32>, vector<2x8x16xf32>, vector<2x8x16xf32>, vector<2x8x16xf32>, vector<2x8x16xf32>, vector<2x8x16xf32>, vector<2x8x16xf32>, vector<2x8x16xf32>, vector<2x8x16xf32>, vector<2x8x16xf32>, vector<2x8x16xf32>, vector<2x8x16xf32>, vector<2x8x16xf32>, vector<2x8x16xf32>, vector<2x8x16xf32> -> vector<2x128x16xf32>
    %55 = vector.shape_cast %34 : vector<16x32xf32> to vector<2x8x32xf32>
    %cst_31 = arith.constant dense<0.000000e+00> : vector<2x32xf32>
    %56 = vector.multi_reduction <add>, %55, %cst_31 [1] : vector<2x8x32xf32> to vector<2x32xf32>
    %c0_32 = arith.constant 0 : index
    %c0_33 = arith.constant 0 : index
    %57 = vector.load %arg17[%c0_32, %c0_33] : memref<32x16xf32, #tpu.memory_space<vmem>>, vector<32x16xf32>
    %cst_34 = arith.constant dense<0.000000e+00> : vector<2x16xf32>
    %58 = tpu.matmul %56, %57, %cst_34 {dimension_numbers = #tpu.dot_dimension_numbers<[1], [0], [0], [1], [0, 0, 1, 1], [], []>} : vector<2x32xf32>, vector<32x16xf32>, vector<2x16xf32> -> vector<2x16xf32>
    %59 = vector.extract_strided_slice %2 {offsets = [0, 0, 60], sizes = [2, 8, 3], strides = [1, 1, 1]} : vector<2x8x63xf32> to vector<2x8x3xf32>
    %60 = vector.shape_cast %59 : vector<2x8x3xf32> to vector<16x3xf32>
    %c0_35 = arith.constant 0 : index
    %c0_36 = arith.constant 0 : index
    %61 = vector.load %arg11[%c0_35, %c0_36] : memref<3x8xf32, #tpu.memory_space<vmem>>, vector<3x8xf32>
    %cst_37 = arith.constant dense<0.000000e+00> : vector<16x8xf32>
    %62 = tpu.matmul %60, %61, %cst_37 {dimension_numbers = #tpu.dot_dimension_numbers<[1], [0], [0], [1], [0, 0, 1, 1], [], []>} : vector<16x3xf32>, vector<3x8xf32>, vector<16x8xf32> -> vector<16x8xf32>
    %63 = vector.shape_cast %62 : vector<16x8xf32> to vector<2x8x8xf32>
    %64 = tpu.concatenate %63, %63, %63, %63, %63, %63, %63, %63 in 2 : vector<2x8x8xf32>, vector<2x8x8xf32>, vector<2x8x8xf32>, vector<2x8x8xf32>, vector<2x8x8xf32>, vector<2x8x8xf32>, vector<2x8x8xf32>, vector<2x8x8xf32> -> vector<2x8x64xf32>
    %c0_38 = arith.constant 0 : index
    %c0_39 = arith.constant 0 : index
    %65 = vector.load %arg12[%c0_38, %c0_39] : memref<24x64xf32, #tpu.memory_space<vmem>>, vector<24x64xf32>
    %cst_40 = arith.constant dense<0.000000e+00> : vector<2x64xf32>
    %66 = tpu.matmul %4, %65, %cst_40 {dimension_numbers = #tpu.dot_dimension_numbers<[1], [0], [0], [1], [0, 0, 1, 1], [], []>} : vector<2x24xf32>, vector<24x64xf32>, vector<2x64xf32> -> vector<2x64xf32>
    %67 = vector.shape_cast %66 : vector<2x64xf32> to vector<2x1x64xf32>
    %68 = vector.broadcast %67 : vector<2x1x64xf32> to vector<2x8x64xf32>
    %69 = arith.subf %68, %64 : vector<2x8x64xf32>
    %c0_41 = arith.constant 0 : index
    %c0_42 = arith.constant 0 : index
    %70 = vector.load %arg13[%c0_41, %c0_42] : memref<1x64xf32, #tpu.memory_space<vmem>>, vector<1x64xf32>
    %71 = vector.shape_cast %70 : vector<1x64xf32> to vector<1x1x64xf32>
    %72 = vector.broadcast %71 : vector<1x1x64xf32> to vector<2x8x64xf32>
    %73 = arith.addf %69, %72 : vector<2x8x64xf32>
    %cst_43 = arith.constant 0.000000e+00 : f32
    %74 = vector.broadcast %cst_43 : f32 to vector<2x8x64xf32>
    %75 = arith.maximumf %73, %74 : vector<2x8x64xf32>
    %76 = vector.shape_cast %75 : vector<2x8x64xf32> to vector<16x64xf32>
    %c0_44 = arith.constant 0 : index
    %c0_45 = arith.constant 0 : index
    %77 = vector.load %arg14[%c0_44, %c0_45] : memref<64x128xf32, #tpu.memory_space<vmem>>, vector<64x128xf32>
    %cst_46 = arith.constant dense<0.000000e+00> : vector<16x128xf32>
    %78 = tpu.matmul %76, %77, %cst_46 {dimension_numbers = #tpu.dot_dimension_numbers<[1], [0], [0], [1], [0, 0, 1, 1], [], []>} : vector<16x64xf32>, vector<64x128xf32>, vector<16x128xf32> -> vector<16x128xf32>
    %c0_47 = arith.constant 0 : index
    %c0_48 = arith.constant 0 : index
    %79 = vector.load %arg15[%c0_47, %c0_48] : memref<1x128xf32, #tpu.memory_space<vmem>>, vector<1x128xf32>
    %80 = vector.broadcast %79 : vector<1x128xf32> to vector<16x128xf32>
    %81 = arith.addf %78, %80 : vector<16x128xf32>
    %cst_49 = arith.constant 0.000000e+00 : f32
    %82 = vector.broadcast %cst_49 : f32 to vector<16x128xf32>
    %83 = arith.maximumf %81, %82 : vector<16x128xf32>
    %84 = vector.shape_cast %83 : vector<16x128xf32> to vector<2x8x128xf32>
    "tpu.trace_start"() <{level = 10 : i32, message = "bjk,bkd->bjd"}> : () -> ()
    %cst_50 = arith.constant dense<0.000000e+00> : vector<2x8x16xf32>
    %85 = tpu.matmul %84, %54, %cst_50 {dimension_numbers = #tpu.dot_dimension_numbers<[2], [1], [1], [2], [0, 0, 0, 1, 1, 2], [0], [0]>} : vector<2x8x128xf32>, vector<2x128x16xf32>, vector<2x8x16xf32> -> vector<2x8x16xf32>
    "tpu.trace_stop"() : () -> ()
    %86 = vector.shape_cast %58 : vector<2x16xf32> to vector<2x1x16xf32>
    %87 = vector.broadcast %86 : vector<2x1x16xf32> to vector<2x8x16xf32>
    %88 = arith.addf %85, %87 : vector<2x8x16xf32>
    %cst_51 = arith.constant 0.000000e+00 : f32
    %89 = vector.broadcast %cst_51 : f32 to vector<2x8x16xf32>
    %90 = arith.maximumf %88, %89 : vector<2x8x16xf32>
    %91 = vector.extract_strided_slice %90 {offsets = [0, 0, 0], sizes = [2, 1, 16], strides = [1, 1, 1]} : vector<2x8x16xf32> to vector<2x1x16xf32>
    %92 = vector.extract_strided_slice %90 {offsets = [0, 1, 0], sizes = [2, 1, 16], strides = [1, 1, 1]} : vector<2x8x16xf32> to vector<2x1x16xf32>
    %93 = vector.extract_strided_slice %90 {offsets = [0, 2, 0], sizes = [2, 1, 16], strides = [1, 1, 1]} : vector<2x8x16xf32> to vector<2x1x16xf32>
    %94 = vector.extract_strided_slice %90 {offsets = [0, 3, 0], sizes = [2, 1, 16], strides = [1, 1, 1]} : vector<2x8x16xf32> to vector<2x1x16xf32>
    %95 = vector.extract_strided_slice %90 {offsets = [0, 4, 0], sizes = [2, 1, 16], strides = [1, 1, 1]} : vector<2x8x16xf32> to vector<2x1x16xf32>
    %96 = vector.extract_strided_slice %90 {offsets = [0, 5, 0], sizes = [2, 1, 16], strides = [1, 1, 1]} : vector<2x8x16xf32> to vector<2x1x16xf32>
    %97 = vector.extract_strided_slice %90 {offsets = [0, 6, 0], sizes = [2, 1, 16], strides = [1, 1, 1]} : vector<2x8x16xf32> to vector<2x1x16xf32>
    %98 = vector.extract_strided_slice %90 {offsets = [0, 7, 0], sizes = [2, 1, 16], strides = [1, 1, 1]} : vector<2x8x16xf32> to vector<2x1x16xf32>
    %99 = tpu.concatenate %91, %92, %93, %94, %95, %96, %97, %98 in 2 : vector<2x1x16xf32>, vector<2x1x16xf32>, vector<2x1x16xf32>, vector<2x1x16xf32>, vector<2x1x16xf32>, vector<2x1x16xf32>, vector<2x1x16xf32>, vector<2x1x16xf32> -> vector<2x1x128xf32>
    %c0_52 = arith.constant 0 : index
    %c0_53 = arith.constant 0 : index
    %c0_54 = arith.constant 0 : index
    %100 = vector.load %arg18[%c0_52, %c0_53, %c0_54] : memref<2x1x128xf32, #tpu.memory_space<vmem>>, vector<2x1x128xf32>
    tpu.vector_store %arg18[%c0_52, %c0_53, %c0_54], %99 {strides = array<i32>} : memref<2x1x128xf32, #tpu.memory_space<vmem>>, vector<2x1x128xf32>,
    return
  }
  func.func @transform_0(%arg0: i32) -> (i32, i32, i32) {
    %c0_i32 = arith.constant 0 : i32
    %c0_i32_0 = arith.constant 0 : i32
    %c0_i32_1 = arith.constant 0 : i32
    return %arg0, %c0_i32, %c0_i32_0 : i32, i32, i32
  }
  func.func @transform_1(%arg0: i32) -> (i32, i32, i32) {
    %c0_i32 = arith.constant 0 : i32
    %c0_i32_0 = arith.constant 0 : i32
    %c0_i32_1 = arith.constant 0 : i32
    return %arg0, %c0_i32, %c0_i32_0 : i32, i32, i32
  }
  func.func @transform_2(%arg0: i32) -> (i32, i32, i32) {
    %c0_i32 = arith.constant 0 : i32
    %c0_i32_0 = arith.constant 0 : i32
    %c0_i32_1 = arith.constant 0 : i32
    return %arg0, %c0_i32, %c0_i32_0 : i32, i32, i32
  }
  func.func @transform_3(%arg0: i32) -> (i32, i32) {
    %c0_i32 = arith.constant 0 : i32
    %c0_i32_0 = arith.constant 0 : i32
    %c0_i32_1 = arith.constant 0 : i32
    return %c0_i32, %c0_i32_0 : i32, i32
  }
  func.func @transform_4(%arg0: i32) -> (i32, i32) {
    %c0_i32 = arith.constant 0 : i32
    %c0_i32_0 = arith.constant 0 : i32
    %c0_i32_1 = arith.constant 0 : i32
    return %c0_i32, %c0_i32_0 : i32, i32
  }
  func.func @transform_5(%arg0: i32) -> (i32, i32) {
    %c0_i32 = arith.constant 0 : i32
    %c0_i32_0 = arith.constant 0 : i32
    %c0_i32_1 = arith.constant 0 : i32
    return %c0_i32, %c0_i32_0 : i32, i32
  }
  func.func @transform_6(%arg0: i32) -> (i32, i32) {
    %c0_i32 = arith.constant 0 : i32
    %c0_i32_0 = arith.constant 0 : i32
    %c0_i32_1 = arith.constant 0 : i32
    return %c0_i32, %c0_i32_0 : i32, i32
  }
  func.func @transform_7(%arg0: i32) -> (i32, i32) {
    %c0_i32 = arith.constant 0 : i32
    %c0_i32_0 = arith.constant 0 : i32
    %c0_i32_1 = arith.constant 0 : i32
    return %c0_i32, %c0_i32_0 : i32, i32
  }
  func.func @transform_8(%arg0: i32) -> (i32, i32) {
    %c0_i32 = arith.constant 0 : i32
    %c0_i32_0 = arith.constant 0 : i32
    %c0_i32_1 = arith.constant 0 : i32
    return %c0_i32, %c0_i32_0 : i32, i32
  }
  func.func @transform_9(%arg0: i32) -> (i32, i32) {
    %c0_i32 = arith.constant 0 : i32
    %c0_i32_0 = arith.constant 0 : i32
    %c0_i32_1 = arith.constant 0 : i32
    return %c0_i32, %c0_i32_0 : i32, i32
  }
  func.func @transform_10(%arg0: i32) -> (i32, i32) {
    %c0_i32 = arith.constant 0 : i32
    %c0_i32_0 = arith.constant 0 : i32
    %c0_i32_1 = arith.constant 0 : i32
    return %c0_i32, %c0_i32_0 : i32, i32
  }
  func.func @transform_11(%arg0: i32) -> (i32, i32) {
    %c0_i32 = arith.constant 0 : i32
    %c0_i32_0 = arith.constant 0 : i32
    %c0_i32_1 = arith.constant 0 : i32
    return %c0_i32, %c0_i32_0 : i32, i32
  }
  func.func @transform_12(%arg0: i32) -> (i32, i32) {
    %c0_i32 = arith.constant 0 : i32
    %c0_i32_0 = arith.constant 0 : i32
    %c0_i32_1 = arith.constant 0 : i32
    return %c0_i32, %c0_i32_0 : i32, i32
  }
  func.func @transform_13(%arg0: i32) -> (i32, i32) {
    %c0_i32 = arith.constant 0 : i32
    %c0_i32_0 = arith.constant 0 : i32
    %c0_i32_1 = arith.constant 0 : i32
    return %c0_i32, %c0_i32_0 : i32, i32
  }
  func.func @transform_14(%arg0: i32) -> (i32, i32) {
    %c0_i32 = arith.constant 0 : i32
    %c0_i32_0 = arith.constant 0 : i32
    %c0_i32_1 = arith.constant 0 : i32
    return %c0_i32, %c0_i32_0 : i32, i32
  }
  func.func @transform_15(%arg0: i32) -> (i32, i32) {
    %c0_i32 = arith.constant 0 : i32
    %c0_i32_0 = arith.constant 0 : i32
    %c0_i32_1 = arith.constant 0 : i32
    return %c0_i32, %c0_i32_0 : i32, i32
  }
  func.func @transform_16(%arg0: i32) -> (i32, i32) {
    %c0_i32 = arith.constant 0 : i32
    %c0_i32_0 = arith.constant 0 : i32
    %c0_i32_1 = arith.constant 0 : i32
    return %c0_i32, %c0_i32_0 : i32, i32
  }
  func.func @transform_17(%arg0: i32) -> (i32, i32, i32) {
    %c0_i32 = arith.constant 0 : i32
    %c0_i32_0 = arith.constant 0 : i32
    %c0_i32_1 = arith.constant 0 : i32
    return %arg0, %c0_i32, %c0_i32_0 : i32, i32, i32
  }
}

</mosaic_0001>

<bundles_post_ra>
// kernel: hand_decoder_nerf2d.1
= control target key start
LH: loop header
LB: loop body
LE: loop exit
PB: predicated region body
PF: predicated region fallthrough
CT: control target
= control target key end

     0   :  { %v1892_v0 = vmov 0.0|0.0   ;;  %vm1893_vm0 = vmmov 0   ;;  %v1894_v4 = vmov 0.0   ;;  %v1895_v5 = vmov 1966171168   ;;  %s1900_s19 = smov 24   ;;  %s2367_s3 = inlined_call_operand.vmem [shape: f32[64,32], index: 3, kind: input, shape index: {}]   ;;  %s2368_s4 = inlined_call_operand.vmem [shape: f32[63,32], index: 4, kind: input, shape index: {}]   ;;  %s2369_s0 = inlined_call_operand.vmem [shape: f32[2,1,64], index: 0, kind: input, shape index: {}]   ;;  %s2370_s1 = inlined_call_operand.vmem [shape: f32[2,8,63], index: 1, kind: input, shape index: {}]   ;;  %s2371_s6 = inlined_call_operand.vmem [shape: f32[32,16], index: 6, kind: input, shape index: {}]   ;;  %s2372_s5 = inlined_call_operand.vmem [shape: f32[1,32], index: 5, kind: input, shape index: {}]   ;;  %s2373_s8 = inlined_call_operand.vmem [shape: f32[16,32], index: 8, kind: input, shape index: {}]   ;;  %s2374_s15 = inlined_call_operand.vmem [shape: f32[32,256], index: 15, kind: input, shape index: {}]   ;;  %s2375_s7 = inlined_call_operand.vmem [shape: f32[1,16], index: 7, kind: input, shape index: {}]   ;;  %s2376_s16 = inlined_call_operand.vmem [shape: f32[32,16], index: 16, kind: input, shape index: {}]   ;;  %s2377_s10 = inlined_call_operand.vmem [shape: f32[3,8], index: 10, kind: input, shape index: {}]   ;;  %s2378_s9 = inlined_call_operand.vmem [shape: f32[1,32], index: 9, kind: input, shape index: {}]   ;;  %s2379_s2 = inlined_call_operand.vmem [shape: f32[2,1,24], index: 2, kind: input, shape index: {}]   ;;  %s2380_s11 = inlined_call_operand.vmem [shape: f32[24,64], index: 11, kind: input, shape index: {}]   ;;  %s2381_s13 = inlined_call_operand.vmem [shape: f32[64,128], index: 13, kind: input, shape index: {}]   ;;  %s2382_s12 = inlined_call_operand.vmem [shape: f32[1,64], index: 12, kind: input, shape index: {}]   ;;  %s2383_s14 = inlined_call_operand.vmem [shape: f32[1,128], index: 14, kind: input, shape index: {}]   ;;  %s2384_s17 = inlined_call_operand.vmem [shape: f32[2,1,128], index: 17, kind: output, shape index: {}]  }
   0x1   :  { %2387 = sst [smem:[#allocation2_spill]] %s2367_s3  ;;  %1682 = vmatprep.subr.bf16.mxu0 %v1892_v0  ;;  %1528 = vmatprep.mubr.msk.f32.mxu0 %vm1893_vm0, %v1894_v4  ;;  %v74_v6 = vunpack.c.l.s4 %v1895_v5  ;;  %v76_v7 = vlaneseq  ;;  %v56_v23 = vld [vmem:[%s2369_s0] sm:$0x1]  ;;  %vm168_vm1 = vcmask 515072   ;;  %v57_v24 = vld [vmem:[%s2369_s0 + $0x1] sm:$0x1] }
   0x2   :  { %2388 = sst [smem:[#allocation3_spill]] %s2368_s4  ;;  %s2389_s26 = sld [smem:[#allocation2_spill]]  ;;  %v72_v26 = vcombine.low %v56_v23, %v57_v24  ;;  %v2053_v28 = vld [vmem:[%s2370_s1] sm:$0xff]  ;;  %vm175_vm2 = vcmask 1046528   ;;  %vm1896_vm3 = vmmov 1   ;;  %vm87_vm5 = vcmask 523264  }
   0x3   :  { %s2390_s20 = sld [smem:[#allocation3_spill]]  ;;  %v75_v14 = vunpack.c.0.s8 %v74_v6  ;;  %v2023_v15 = vshrl.u32 %v76_v7, 7  ;;  %1547 = vmatprep.mubr.msk.f32.mxu1 %vm168_vm1, %v2053_v28  ;;  %vm1707_vm4 = vmpackc.low %vm175_vm2, %vm1896_vm3  ;;  %v59_v38 = vld [vmem:[%s2370_s1 + $0x8] sm:$0xff]  ;;  %v300_v39 = vld [vmem:[%s2371_s6] sm:$0xff]  ;;  %vm311_vm6 = vcmask 261120   ;;  %vm404_vm7 = vcmask 130048  }
   0x4   :  { %v301_v40 = vld [vmem:[%s2371_s6 + $0x8] sm:$0xff]  ;;  %v302_v42 = vld [vmem:[%s2371_s6 + $0x10] sm:$0xff]  ;;  %v303_v43 = vld [vmem:[%s2371_s6 + $0x18] sm:$0xff]  ;;  %vm771_vm8 = vcmask 1042432   ;;  %vm899_vm9 = vcmask 195584   ;;  %vm687_vm10 = vcmask 1041409  }
   0x5   :  { %v2048_v27 = vsub.s32 %v75_v14, %v2023_v15  ;;  %v1712_v41 = vpack.c.bf16 %v301_v40, %v300_v39  ;;  %v1716_v44 = vpack.c.bf16 %v303_v43, %v302_v42  ;;  %v2095_v48 = vsub.s32 0, %v2023_v15  ;;  %v1409_v55 = vld [vmem:[%s2372_s5] ss:$0 sm:$0xff]  ;;  %s1897_s5 = smov 68   ;;  %v491_v5 = vld [vmem:[%s2374_s15 + $0x18] sm:$0xff]  ;;  %v682_v24 = vld [vmem:[%s2376_s16 + $0x8] sm:$0xff] }
   0x6   :  { %v395_v63 = vld [vmem:[%s2373_s8] sm:$0xff]  ;;  %762 = vrot.lane.b32.xlu0 %v2053_v28, %s1897_s5  ;;  %v684_v28 = vld [vmem:[%s2376_s16 + $0x18] sm:$0xff]  ;;  %vm766_vm11 = vcmask 23552   ;;  %s1899_s6 = smov 16   ;;  %s1902_s24 = smov 40   ;;  %vm894_vm12 = vcmask 64512  }
   0x7   :  { %v79_v34 = vrot.slane %v72_v26, %v2048_v27  ;;  %v1410_v7 = vld [vmem:[%s2375_s7] ss:$0 sm:$0xff]  ;;  %v683_v26 = vld [vmem:[%s2376_s16 + $0x10] sm:$0xff]  ;;  %s1904_s28 = smov 56   ;;  %s1907_s29 = smov 96   ;;  %vm904_vm13 = vcmask 326656  }
   0x8   :  { %v62_v1 = vld [vmem:[%s2389_s26] sm:$0xff]  ;;  %v63_v2 = vld [vmem:[%s2389_s26 + $0x8] sm:$0xff]  ;;  %v64_v3 = vld [vmem:[%s2389_s26 + $0x10] sm:$0xff]  ;;  %vm907_vm14 = vcmask 392192   ;;  %vm910_vm15 = vcmask 457728   ;;  %vm1396_vm2 = vcmask 916480  }
   0x9   :  { %v1683_v8 = vpack.c.bf16 %v63_v2, %v62_v1  ;;  %v65_v9 = vld [vmem:[%s2389_s26 + $0x18] sm:$0xff]  ;;  %v160_v10 = vld [vmem:[%s2390_s20] sm:$0xff]  ;;  %v161_v11 = vld [vmem:[%s2390_s20 + $0x8] sm:$0xff]  ;;  %v86_v37 = vrot.slane %v79_v34, %v2048_v27 }
   0xa   :  { %v1694_v12 = vpack.c.bf16 %v161_v11, %v160_v10  ;;  %v162_v13 = vld [vmem:[%s2390_s20 + $0x10] sm:$0xff]  ;;  %v1686_v16 = vpack.c.bf16 %v65_v9, %v64_v3  ;;  %v66_v17 = vld [vmem:[%s2389_s26 + $0x20] sm:$0xff]  ;;  %v67_v18 = vld [vmem:[%s2389_s26 + $0x28] sm:$0xff]  ;;  %764 = vrot.lane.b32.xlu0 %v59_v38, %s1897_s5 }
   0xb   :  { %1684 = vmatpush3.bf16.msra.mxu0 %v1683_v8  ;;  %v163_v19 = vld [vmem:[%s2390_s20 + $0x18] sm:$0xff]  ;;  %v164_v21 = vld [vmem:[%s2390_s20 + $0x20] sm:$0xff]  ;;  %v165_v22 = vld [vmem:[%s2390_s20 + $0x28] sm:$0xff]  ;;  %v1689_v29 = vpack.c.bf16 %v67_v18, %v66_v17 }
   0xc   :  { %1685 = vmatprep.subr.bf16.mxu0 %v1892_v0  ;;  %1695 = vmatprep.subr.bf16.mxu1 %v1694_v12  ;;  %v1698_v20 = vpack.c.bf16 %v163_v19, %v162_v13  ;;  %v1702_v25 = vpack.c.bf16 %v165_v22, %v164_v21  ;;  %v166_v30 = vld [vmem:[%s2390_s20 + $0x30] sm:$0xff]  ;;  %v167_v31 = vld [vmem:[%s2390_s20 + $0x38] sm:$0x7f]  ;;  %v396_v1 = vld [vmem:[%s2373_s8 + $0x8] sm:$0xff] }
   0xd   :  { %1697 = vmatpush3.bf16.msra.mxu1 %v1694_v12  ;;  %v68_v32 = vld [vmem:[%s2389_s26 + $0x30] sm:$0xff]  ;;  %v69_v33 = vld [vmem:[%s2389_s26 + $0x38] sm:$0xff]  ;;  %v1706_v35 = vpack.c.bf16 %v167_v31, %v166_v30  ;;  %v1720_v2 = vpack.c.bf16 %v396_v1, %v395_v63  ;;  %v489_v3 = vld [vmem:[%s2374_s15 + $0x8] sm:$0xff] }
   0xe   :  { %1699 = vmatprep.subr.bf16.mxu1 %v1698_v20  ;;  %v1692_v36 = vpack.c.bf16 %v69_v33, %v68_v32  ;;  %v1724_v6 = vpack.c.bf16 %v491_v5, %v489_v3  ;;  %v488_v11 = vld [vmem:[%s2374_s15] sm:$0xff]  ;;  %v490_v12 = vld [vmem:[%s2374_s15 + $0x10] sm:$0xff]  ;;  %v493_v17 = vld [vmem:[%s2374_s15 + $0x28] sm:$0xff] }
   0xf   :  { %1687 = vmatpush3.bf16.msra.mxu0 %v1686_v16  ;;  %v1726_v15 = vpack.c.bf16 %v490_v12, %v488_v11  ;;  %v495_v18 = vld [vmem:[%s2374_s15 + $0x38] sm:$0xff]  ;;  %v494_v21 = vld [vmem:[%s2374_s15 + $0x30] sm:$0xff]  ;;  %v681_v23 = vld [vmem:[%s2376_s16] sm:$0xff]  ;;  %s1903_s16 = smov 48  }
  0x10   :  { %1688 = vmatprep.subr.bf16.mxu0 %v1892_v0  ;;  %v1728_v19 = vpack.c.bf16 %v495_v18, %v493_v17  ;;  %v761_v30 = vld [vmem:[%s2377_s10] sm:$0x7]  ;;  %v1053_v18 = vld [vmem:[%s2381_s13 + $0x10] sm:$0xff]  ;;  %s1905_s10 = smov 112  }
  0x11   :  { %1701 = vmatpush3.bf16.msra.mxu1 %v1698_v20  ;;  %v492_v20 = vld [vmem:[%s2374_s15 + $0x20] sm:$0xff]  ;;  %s1901_s15 = smov 32  }
  0x12   :  { %1703 = vmatprep.subr.bf16.mxu1 %v1702_v25  ;;  %v1730_v22 = vpack.c.bf16 %v494_v21, %v492_v20  ;;  %v1413_v31 = vld [vmem:[%s2378_s9] ss:$0 sm:$0xff]  ;;  %v61_v33 = vld [vmem:[%s2379_s2 + $0x1] sm:$0x1] }
  0x13   :  { %1690 = vmatpush3.bf16.msra.mxu0 %v1689_v29  ;;  %v1736_v29 = vpack.c.bf16 %v684_v28, %v683_v26  ;;  %v60_v32 = vld [vmem:[%s2379_s2] sm:$0x1]  ;;  %s1908_s2 = smov 64  }
  0x14   :  { %1691 = vmatprep.subr.bf16.mxu0 %v1892_v0  ;;  %v918_v40 = vcombine.low %v60_v32, %v61_v33  ;;  %v1055_v21 = vld [vmem:[%s2381_s13 + $0x20] sm:$0xff] }
  0x15   :  { %1705 = vmatpush3.bf16.msra.mxu1 %v1702_v25  ;;  %v1733_v25 = vpack.c.bf16 %v682_v24, %v681_v23  ;;  %v1057_v24 = vld [vmem:[%s2381_s13 + $0x30] sm:$0xff] }
  0x16   :  { %1708 = vmatprep.subr.msk.bf16.mxu1 %vm1707_vm4, %v1706_v35 }
  0x17   :  { %1693 = vmatpush3.bf16.msra.mxu0 %v1692_v36  ;;  %v914_v36 = vld [vmem:[%s2380_s11 + $0x8] sm:$0xff] }
  0x18   :  { %1732 = vmatprep.subr.bf16.mxu0 %v1892_v0 }
  0x19   :  { %1711 = vmatpush3.bf16.msk.msra.mxu1 %vm1707_vm4, %v1706_v35  ;;  %v913_v35 = vld [vmem:[%s2380_s11] sm:$0xff] }
  0x1a   :  { %1529 = vmatmul.mubr.msk.f32.vlgmr.msra.gmra.mrb[0].mxu0 %vm87_vm5, %v86_v37  ;;  %1713 = vmatprep.subr.bf16.mxu1 %v1712_v41  ;;  %v1739_v42 = vpack.c.bf16 %v914_v36, %v913_v35 }
  0x1b   :  { %1576 = vmatprep.mubr.msk.f32.mxu0 %vm1893_vm0, %v1894_v4  ;;  %1734 = vmatpush3.bf16.msra.mxu0 %v1733_v25  ;;  %v1058_v25 = vld [vmem:[%s2381_s13 + $0x38] sm:$0xff] }
  0x1c   :  { %1548 = vmatmul.mubr.msk.f32.vlgmr.msra.gmra.mrb[0].mxu1 %vm168_vm1, %v59_v38  ;;  %1735 = vmatprep.subr.bf16.mxu0 %v1892_v0  ;;  %v1753_v26 = vpack.c.bf16 %v1058_v25, %v1057_v24  ;;  %vm1393_vm1 = vcmask 785408  }
  0x1d   :  { %1715 = vmatpush3.bf16.msra.mxu1 %v1712_v41 }
  0x1e   :  { %1717 = vmatprep.subr.bf16.mxu1 %v1716_v44 }
  0x1f   :  { %1737 = vmatpush3.bf16.msra.mxu0 %v1736_v29 }
  0x20   :  { %1579 = vmatprep.subr.msk.mxu0 %vm771_vm8, %v761_v30 }
  0x21   :  { %1719 = vmatpush3.bf16.msra.mxu1 %v1716_v44 }
  0x22   :  { %1721 = vmatprep.subr.bf16.mxu1 %v1720_v2 }
  0xed   :  { %v156_v45 = vpop.f32.mrb[0].mxu0 }
  0xee   :  { %v261_v46 = vrot.slane %v156_v45, %v2048_v27  ;;  %v1530_v47 = vpop.f32.mrb[1].mxu0 }
  0xef   :  { %v1549_v49 = vpop.f32.mrb[0].mxu1  ;;  %v925_v47 = vrot.slane %v918_v40, %v2048_v27 }
  0xf0   :  { %v262_v50 = vcombine.high %v261_v46, %v261_v46  ;;  %v269_v51 = vrot.slane %v261_v46, %v2048_v27  ;;  %v245_v52 = vpop.f32.mrb[1].mxu1 }
  0xf2   :  { %v276_v53 = vrot.slane %v262_v50, %v2048_v27  ;;  %v280_v54 = vrot.slane %v269_v51, %v2095_v48  ;;  %v915_v51 = vld [vmem:[%s2380_s11 + $0x10] sm:$0xff]  ;;  %s1898_s11 = smov 8  }
  0xf4   :  { %v284_v56 = vrot.slane %v276_v53, %v2095_v48  ;;  %v287_v57 = vadd.f32 %v280_v54, %v245_v52  ;;  %v932_v54 = vrot.slane %v925_v47, %v2048_v27 }
  0xf6   :  { %v288_v58 = vadd.f32 %v1549_v49, %v284_v56  ;;  %v296_v59 = vadd.f32 %v1409_v55, %v287_v57 }
  0xf8   :  { %v297_v60 = vadd.f32 %v1409_v55, %v288_v58  ;;  %v298_v61 = vmax.f32 %v296_v59, 0.0 }
  0xfa   :  { %v299_v62 = vmax.f32 %v297_v60, 0.0  ;;  %1558 = vmatprep.mubr.msk.f32.mxu1 %vm311_vm6, %v298_v61  ;;  %v763_v60 = vpop.permute.xlu0 %762 }
  0xfc   :  { %1559 = vmatmul.mubr.msk.f32.vlgmr.msra.gmra.mrb[2].mxu1 %vm311_vm6, %v299_v62 }
  0xfd   :  { %1723 = vmatpush3.bf16.msra.mxu1 %v1720_v2 }
  0xfe   :  { %1725 = vmatprep.subr.bf16.mxu1 %v1724_v6  ;;  %v765_v1 = vpop.permute.xlu0 %764 }
 0x1cf   :  { %v1560_v8 = vpop.f32.mrb[2].mxu1 }
 0x1d0   :  { %v390_v9 = vadd.f32 %v1560_v8, %v1410_v7  ;;  %v384_v10 = vpop.f32.mrb[3].mxu1 }
 0x1d1   :  { %v385_v13 = vadd.f32 %v1410_v7, %v384_v10 }
 0x1d2   :  { %v394_v16 = vmax.f32 %v390_v9, 0.0 }
 0x1d3   :  { %v393_v14 = vmax.f32 %v385_v13, 0.0 }
 0x1d5   :  { %1565 = vmatprep.mubr.msk.f32.mxu1 %vm404_vm7, %v393_v14  ;;  %v1051_v14 = vld [vmem:[%s2381_s13] sm:$0xff] }
 0x1d6   :  { %1566 = vmatmul.mubr.msk.f32.vlgmr.msra.gmra.mrb[4].mxu1 %vm404_vm7, %v394_v16 }
 0x1d7   :  { %1727 = vmatpush1.bf16.msra.mxu1 %v1726_v15  ;;  %566 = vmatprep.mubr.f32.mxu1 %v1894_v4  ;;  %v1052_v15 = vld [vmem:[%s2381_s13 + $0x8] sm:$0xff] }
 0x1d8   :  { %1729 = vmatprep.subr.bf16.mxu1 %v1728_v19  ;;  %v1741_v17 = vpack.c.bf16 %v1052_v15, %v1051_v14  ;;  %v1054_v19 = vld [vmem:[%s2381_s13 + $0x18] sm:$0xff] }
 0x1d9   :  { %v1745_v20 = vpack.c.bf16 %v1054_v19, %v1053_v18 }
 0x1db   :  { %1731 = vmatpush1.bf16.msra.mxu1 %v1730_v22  ;;  %v1056_v22 = vld [vmem:[%s2381_s13 + $0x28] sm:$0xff]  ;;  %s1906_s13 = smov 80  }
 0x1dc   :  { %1738 = vmatprep.subr.bf16.mxu1 %v1892_v0  ;;  %v1749_v23 = vpack.c.bf16 %v1056_v22, %v1055_v21 }
 0x2a9   :  { %v1567_v34 = vpop.f32.mrb[4].mxu1 }
 0x2aa   :  { %v483_v37 = vadd.f32 %v1567_v34, %v1413_v31  ;;  %v477_v38 = vpop.f32.mrb[5].mxu1 }
 0x2ab   :  { %v478_v39 = vadd.f32 %v1413_v31, %v477_v38 }
 0x2ac   :  { %v487_v41 = vmax.f32 %v483_v37, 0.0 }
 0x2ad   :  { %v486_v43 = vmax.f32 %v478_v39, 0.0 }
 0x2ae   :  { %v674_v44 = vsel %vm311_vm6, %v487_v41, 0.0 }
 0x2af   :  { %v675_v45 = vrot.slane %v674_v44, 4  ;;  %v667_v46 = vsel %vm311_vm6, %v486_v43, 0.0  ;;  %1416 = vmatmul.mubr.msk.f32.vlgmr.msra.gmra.mrb[6].mxu1 %vm311_vm6, %v486_v43 }
 0x2b0   :  { %v668_v49 = vrot.slane %v667_v46, 4  ;;  %572 = vmatprep.mubr.f32.mxu1 %v1894_v4  ;;  %1740 = vmatpush3.bf16.msra.mxu1 %v1739_v42 }
 0x2b1   :  { %v676_v50 = vadd.f32 %v675_v45, %v674_v44  ;;  %1588 = vmatprep.subr.mxu1 %v1894_v4 }
 0x2b2   :  { %v669_v52 = vadd.f32 %v668_v49, %v667_v46 }
 0x2b3   :  { %v677_v53 = vrot.slane %v676_v50, 2  ;;  %1417 = vmatmul.mubr.msk.f32.gmra.mrb[8].mxu1 %vm311_vm6, %v487_v41 }
 0x2b4   :  { %v670_v55 = vrot.slane %v669_v52, 2  ;;  %1589 = vmatpush3.msra.mxu1 %v915_v51  ;;  %1590 = vmatprep.mubr.msk.f32.mxu1 %vm1893_vm0, %v1894_v4 }
 0x2b5   :  { %v678_v56 = vadd.f32 %v677_v53, %v676_v50  ;;  %1757 = vmatprep.subr.bf16.mxu1 %v1892_v0 }
 0x2b6   :  { %v671_v57 = vadd.f32 %v670_v55, %v669_v52 }
 0x2b7   :  { %v679_v58 = vrot.slane %v678_v56, 1  ;;  %1591 = vmatmul.mubr.msk.f32.vlgmr.msra.gmra.mrb[10].mxu1 %vm899_vm9, %v932_v54 }
 0x2b8   :  { %v672_v59 = vrot.slane %v671_v57, 1  ;;  %1644 = vmatprep.mubr.msk.f32.mxu1 %vm1893_vm0, %v1894_v4 }
 0x2b9   :  { %v680_v61 = vadd.f32 %v679_v58, %v678_v56 }
 0x2ba   :  { %v673_v62 = vadd.f32 %v672_v59, %v671_v57 }
 0x2bc   :  { %v688_v63 = vsel %vm687_vm10, %v680_v61, %v673_v62  ;;  %v1423_v61 = vld [vmem:[%s2382_s12] ss:$0 sm:$0xff] }
 0x2bd   :  { %1577 = vmatmul.mubr.msk.f32.vlgmr.msra.gmra.mrb[2].mxu0 %vm311_vm6, %v688_v63 }
 0x2be   :  { %1580 = vmatpush3.msk.msra.mxu0 %vm771_vm8, %v761_v30  ;;  %1581 = vmatprep.mubr.msk.f32.mxu0 %vm766_vm11, %v763_v60 }
 0x2bf   :  { %1742 = vmatprep.subr.bf16.mxu0 %v1741_v17 }
 0x2c1   :  { %1582 = vmatmul.mubr.msk.f32.vlgmr.msra.gmra.mrb[4].mxu0 %vm766_vm11, %v765_v1 }
 0x2c2   :  { %1744 = vmatpush3.bf16.msra.mxu0 %v1741_v17 }
 0x2c3   :  { %1746 = vmatprep.subr.bf16.mxu0 %v1745_v20 }
 0x2c6   :  { %1748 = vmatpush3.bf16.msra.mxu0 %v1745_v20 }
 0x2c7   :  { %1750 = vmatprep.subr.bf16.mxu0 %v1749_v23 }
 0x2ca   :  { %1752 = vmatpush3.bf16.msra.mxu0 %v1749_v23 }
 0x2cb   :  { %1754 = vmatprep.subr.bf16.mxu0 %v1753_v26 }
 0x2ce   :  { %1756 = vmatpush3.bf16.msra.mxu0 %v1753_v26 }
 0x2cf   :  { %1781 = vmatprep.subr.bf16.mxu0 %v1892_v0 }
 0x382   :  { %v2195_v2 = vpop.f32.mrb[6].mxu1 }
 0x383   :  { %v2197_v3 = vpop.f32.mrb[7].mxu1 }
 0x386   :  { %v2199_v5 = vpop.f32.mrb[8].mxu1 }
 0x387   :  { %v2201_v6 = vpop.f32.mrb[9].mxu1  ;;  %v1822_v7 = vpack.i.bf16 %v2199_v5, %v2195_v2 }
 0x388   :  { %v2207_v8 = vpack.i.bf16 %v2201_v6, %v2197_v3 }
 0x38a   :  { %v2219_v13 = vpop.f32.mrb[10].mxu1 }
 0x38b   :  { %v1592_v16 = vpop.f32.mrb[11].mxu1  ;;  %v1012_v36 = vrot.slane %v2219_v13, %v2048_v27 }
 0x38d   :  { %v1013_v39 = vcombine.high %v1012_v36, %v1012_v36  ;;  %v1020_v40 = vrot.slane %v1012_v36, %v2048_v27 }
 0x38f   :  { %v1027_v44 = vrot.slane %v1013_v39, %v2048_v27  ;;  %v1031_v50 = vrot.slane %v1020_v40, %v2095_v48 }
 0x390   :  { %v2209_v9 = vpop.f32.mrb[2].mxu0 }
 0x391   :  { %v1578_v10 = vpop.f32.mrb[3].mxu0  ;;  %v1035_v59 = vrot.slane %v1027_v44, %v2095_v48 }
 0x394   :  { %v2211_v11 = vpop.f32.mrb[4].mxu0 }
 0x395   :  { %854 = vrot.lane.b32.xlu1 %v2211_v11, %s1898_s11  ;;  %v2215_v12 = vpop.f32.mrb[5].mxu0 }
 0x396   :  { %858 = vrot.lane.b32.xlu0 %v2215_v12, %s1899_s6 }
 0x399   :  { %860 = vrot.lane.b32.xlu1 %v2211_v11, %s1899_s6 }
 0x39a   :  { %864 = vrot.lane.b32.xlu0 %v2215_v12, %s1900_s19 }
 0x39d   :  { %866 = vrot.lane.b32.xlu1 %v2211_v11, %s1900_s19 }
 0x39e   :  { %870 = vrot.lane.b32.xlu0 %v2215_v12, %s1901_s15 }
 0x3a1   :  { %872 = vrot.lane.b32.xlu1 %v2211_v11, %s1901_s15 }
 0x3a2   :  { %876 = vrot.lane.b32.xlu0 %v2215_v12, %s1902_s24 }
 0x3a5   :  { %878 = vrot.lane.b32.xlu1 %v2211_v11, %s1902_s24 }
 0x3a6   :  { %882 = vrot.lane.b32.xlu0 %v2215_v12, %s1903_s16 }
 0x3a9   :  { %852 = vrot.lane.b32.xlu1 %v2215_v12, %s1898_s11 }
 0x3aa   :  { %888 = vrot.lane.b32.xlu0 %v2215_v12, %s1904_s28 }
 0x3ad   :  { %884 = vrot.lane.b32.xlu1 %v2211_v11, %s1903_s16 }
 0x3ae   :  { %1823 = vrot.lane.b32.xlu0 %v1822_v7, %s1905_s10 }
 0x3b1   :  { %890 = vrot.lane.b32.xlu1 %v2211_v11, %s1904_s28 }
 0x3b2   :  { %1833 = vrot.lane.b32.xlu0 %v1822_v7, %s1906_s13 }
 0x3b5   :  { %1828 = vrot.lane.b32.xlu1 %v1822_v7, %s1907_s29 }
 0x3b6   :  { %1843 = vrot.lane.b32.xlu0 %v1822_v7, %s1903_s16 }
 0x3b9   :  { %1838 = vrot.lane.b32.xlu1 %v1822_v7, %s1908_s2 }
 0x3ba   :  { %1853 = vrot.lane.b32.xlu0 %v1822_v7, %s1899_s6 }
 0x3bd   :  { %1848 = vrot.lane.b32.xlu1 %v1822_v7, %s1901_s15 }
 0x3be   :  { %1863 = vrot.lane.b32.xlu0 %v2207_v8, %s1907_s29 }
 0x3c1   :  { %1858 = vrot.lane.b32.xlu1 %v2207_v8, %s1905_s10 }
 0x3c2   :  { %1873 = vrot.lane.b32.xlu0 %v2207_v8, %s1908_s2 }
 0x3c5   :  { %1868 = vrot.lane.b32.xlu1 %v2207_v8, %s1906_s13 }
 0x3c6   :  { %1883 = vrot.lane.b32.xlu0 %v2207_v8, %s1901_s15 }
 0x3c9   :  { %1878 = vrot.lane.b32.xlu1 %v2207_v8, %s1903_s16 }
 0x3cd   :  { %1888 = vrot.lane.b32.xlu1 %v2207_v8, %s1899_s6 }
 0x407   :  { %v855_v28 = vpop.permute.xlu1 %854 }
 0x408   :  { %v859_v29 = vpop.permute.xlu0 %858  ;;  %v896_v46 = vsel %vm894_vm12, %v2211_v11, %v855_v28 }
 0x40b   :  { %v861_v30 = vpop.permute.xlu1 %860 }
 0x40c   :  { %v865_v31 = vpop.permute.xlu0 %864  ;;  %v898_v49 = vsel %vm404_vm7, %v896_v46, %v861_v30 }
 0x40f   :  { %v867_v32 = vpop.permute.xlu1 %866 }
 0x410   :  { %v871_v33 = vpop.permute.xlu0 %870  ;;  %v901_v53 = vsel %vm899_vm9, %v898_v49, %v867_v32 }
 0x413   :  { %v873_v34 = vpop.permute.xlu1 %872 }
 0x414   :  { %v877_v35 = vpop.permute.xlu0 %876  ;;  %v903_v56 = vsel %vm311_vm6, %v901_v53, %v873_v34 }
 0x417   :  { %v879_v37 = vpop.permute.xlu1 %878 }
 0x418   :  { %v883_v38 = vpop.permute.xlu0 %882  ;;  %v906_v60 = vsel %vm904_vm13, %v903_v56, %v879_v37 }
 0x41b   :  { %v853_v41 = vpop.permute.xlu1 %852 }
 0x41c   :  { %v895_v42 = vsel %vm894_vm12, %v2215_v12, %v853_v41  ;;  %v889_v43 = vpop.permute.xlu0 %888 }
 0x41d   :  { %v897_v45 = vsel %vm404_vm7, %v895_v42, %v859_v29 }
 0x41e   :  { %v900_v47 = vsel %vm899_vm9, %v897_v45, %v865_v31 }
 0x41f   :  { %v902_v51 = vsel %vm311_vm6, %v900_v47, %v871_v33  ;;  %v885_v52 = vpop.permute.xlu1 %884 }
 0x420   :  { %v905_v54 = vsel %vm904_vm13, %v902_v51, %v877_v35  ;;  %v1824_v55 = vpop.permute.xlu0 %1823  ;;  %v909_v1 = vsel %vm907_vm14, %v906_v60, %v885_v52 }
 0x421   :  { %v908_v57 = vsel %vm907_vm14, %v905_v54, %v883_v38  ;;  %v1825_v58 = vunpack.i.l.bf16 %v1824_v55  ;;  %v1826_v14 = vunpack.i.h.bf16 %v1824_v55 }
 0x422   :  { %v911_v62 = vsel %vm910_vm15, %v908_v57, %v889_v43 }
 0x423   :  { %v1038_v63 = vsub.f32 %v1031_v50, %v911_v62  ;;  %v1758_v7 = vpack.c.bf16 %v1825_v58, %v2195_v2  ;;  %v891_v8 = vpop.permute.xlu1 %890  ;;  %v1782_v2 = vpack.c.bf16 %v1826_v14, %v2199_v5 }
 0x424   :  { %v912_v10 = vsel %vm910_vm15, %v909_v1, %v891_v8  ;;  %v1834_v11 = vpop.permute.xlu0 %1833 }
 0x425   :  { %v1047_v12 = vadd.f32 %v1423_v61, %v1038_v63  ;;  %v1039_v13 = vsub.f32 %v1035_v59, %v912_v10  ;;  %1759 = vmatpush3.bf16.msra.mxu1 %v1758_v7  ;;  %v1835_v18 = vunpack.i.l.bf16 %v1834_v11  ;;  %v1836_v25 = vunpack.i.h.bf16 %v1834_v11  ;;  %v1424_v11 = vld [vmem:[%s2383_s14] ss:$0 sm:$0xff] }
 0x426   :  { %1760 = vmatprep.subr.bf16.mxu1 %v1892_v0 }
 0x427   :  { %v1049_v15 = vmax.f32 %v1047_v12, 0.0  ;;  %v1048_v16 = vadd.f32 %v1423_v61, %v1039_v13  ;;  %v1829_v17 = vpop.permute.xlu1 %1828 }
 0x428   :  { %v1830_v19 = vunpack.i.l.bf16 %v1829_v17  ;;  %v1844_v20 = vpop.permute.xlu0 %1843  ;;  %v1831_v22 = vunpack.i.h.bf16 %v1829_v17 }
 0x429   :  { %v1050_v21 = vmax.f32 %v1048_v16, 0.0  ;;  %1609 = vmatprep.mubr.msk.f32.mxu0 %vm87_vm5, %v1049_v15  ;;  %v1845_v26 = vunpack.i.l.bf16 %v1844_v20  ;;  %v1846_v33 = vunpack.i.h.bf16 %v1844_v20 }
 0x42a   :  { %v1761_v23 = vpack.c.bf16 %v1835_v18, %v1830_v19  ;;  %v1785_v30 = vpack.c.bf16 %v1836_v25, %v1831_v22  ;;  %v1156_v18 = vrot.slane %v2209_v9, %v2048_v27 }
 0x42b   :  { %1610 = vmatmul.mubr.msk.f32.vlgmr.msra.gmra.mrb[6].mxu0 %vm87_vm5, %v1050_v21  ;;  %v1839_v24 = vpop.permute.xlu1 %1838 }
 0x42c   :  { %1783 = vmatpush3.bf16.msra.mxu0 %v1782_v2  ;;  %v1840_v28 = vunpack.i.l.bf16 %v1839_v24  ;;  %v1854_v29 = vpop.permute.xlu0 %1853  ;;  %1762 = vmatpush3.bf16.msra.mxu1 %v1761_v23  ;;  %v1841_v31 = vunpack.i.h.bf16 %v1839_v24  ;;  %v1157_v19 = vcombine.high %v1156_v18, %v1156_v18  ;;  %v1164_v20 = vrot.slane %v1156_v18, %v2048_v27 }
 0x42d   :  { %1784 = vmatprep.subr.bf16.mxu0 %v1892_v0  ;;  %1763 = vmatprep.subr.bf16.mxu1 %v1892_v0  ;;  %v1855_v34 = vunpack.i.l.bf16 %v1854_v29  ;;  %v1856_v41 = vunpack.i.h.bf16 %v1854_v29 }
 0x42e   :  { %v1764_v32 = vpack.c.bf16 %v1845_v26, %v1840_v28  ;;  %1679 = vmatprep.mubr.msk.f32.mxu0 %vm1893_vm0, %v1894_v4  ;;  %v1788_v37 = vpack.c.bf16 %v1846_v33, %v1841_v31  ;;  %v1175_v22 = vrot.slane %v1164_v20, %v2095_v48  ;;  %vm1390_vm0 = vcmask 654336  }
 0x42f   :  { %v1849_v5 = vpop.permute.xlu1 %1848 }
 0x430   :  { %v1850_v35 = vunpack.i.l.bf16 %v1849_v5  ;;  %1786 = vmatpush3.bf16.msra.mxu0 %v1785_v30  ;;  %1765 = vmatpush3.bf16.msra.mxu1 %v1764_v32  ;;  %v1864_v36 = vpop.permute.xlu0 %1863  ;;  %v1851_v38 = vunpack.i.h.bf16 %v1849_v5 }
 0x431   :  { %1787 = vmatprep.subr.bf16.mxu0 %v1892_v0  ;;  %1766 = vmatprep.subr.bf16.mxu1 %v1892_v0  ;;  %v1865_v47 = vunpack.i.l.bf16 %v1864_v36  ;;  %v1866_v54 = vunpack.i.h.bf16 %v1864_v36 }
 0x432   :  { %v1767_v39 = vpack.c.bf16 %v1855_v34, %v1850_v35  ;;  %v1791_v4 = vpack.c.bf16 %v1856_v41, %v1851_v38 }
 0x433   :  { %v1859_v40 = vpop.permute.xlu1 %1858 }
 0x434   :  { %v1860_v42 = vunpack.i.l.bf16 %v1859_v40  ;;  %1789 = vmatpush3.bf16.msra.mxu0 %v1788_v37  ;;  %1768 = vmatpush3.bf16.msra.mxu1 %v1767_v39  ;;  %v1861_v43 = vunpack.i.h.bf16 %v1859_v40  ;;  %v1874_v45 = vpop.permute.xlu0 %1873 }
 0x435   :  { %1790 = vmatprep.subr.bf16.mxu0 %v1892_v0  ;;  %1769 = vmatprep.subr.bf16.mxu1 %v1892_v0  ;;  %v1875_v55 = vunpack.i.l.bf16 %v1874_v45  ;;  %v1876_v61 = vunpack.i.h.bf16 %v1874_v45 }
 0x436   :  { %v1770_v44 = vpack.c.bf16 %v1860_v42, %v2197_v3  ;;  %v1794_v50 = vpack.c.bf16 %v1861_v43, %v2201_v6 }
 0x437   :  { %v1869_v46 = vpop.permute.xlu1 %1868 }
 0x438   :  { %v1870_v49 = vunpack.i.l.bf16 %v1869_v46  ;;  %1792 = vmatpush3.bf16.msra.mxu0 %v1791_v4  ;;  %1771 = vmatpush3.bf16.msra.mxu1 %v1770_v44  ;;  %v1871_v51 = vunpack.i.h.bf16 %v1869_v46  ;;  %v1884_v3 = vpop.permute.xlu0 %1883 }
 0x439   :  { %1793 = vmatprep.subr.bf16.mxu0 %v1892_v0  ;;  %1772 = vmatprep.subr.bf16.mxu1 %v1892_v0  ;;  %v1885_v62 = vunpack.i.l.bf16 %v1884_v3  ;;  %v1886_v8 = vunpack.i.h.bf16 %v1884_v3 }
 0x43a   :  { %v1773_v52 = vpack.c.bf16 %v1870_v49, %v1865_v47  ;;  %v1797_v57 = vpack.c.bf16 %v1871_v51, %v1866_v54 }
 0x43b   :  { %v1879_v53 = vpop.permute.xlu1 %1878 }
 0x43c   :  { %v1880_v56 = vunpack.i.l.bf16 %v1879_v53  ;;  %1795 = vmatpush3.bf16.msra.mxu0 %v1794_v50  ;;  %1774 = vmatpush3.bf16.msra.mxu1 %v1773_v52  ;;  %v1881_v58 = vunpack.i.h.bf16 %v1879_v53 }
 0x43d   :  { %1796 = vmatprep.subr.bf16.mxu0 %v1892_v0  ;;  %1775 = vmatprep.subr.bf16.mxu1 %v1892_v0 }
 0x43e   :  { %v1776_v59 = vpack.c.bf16 %v1880_v56, %v1875_v55  ;;  %v1800_v63 = vpack.c.bf16 %v1881_v58, %v1876_v61 }
 0x43f   :  { %v1889_v60 = vpop.permute.xlu1 %1888 }
 0x440   :  { %v1890_v6 = vunpack.i.l.bf16 %v1889_v60  ;;  %1798 = vmatpush3.bf16.msra.mxu0 %v1797_v57  ;;  %1777 = vmatpush3.bf16.msra.mxu1 %v1776_v59  ;;  %v1891_v1 = vunpack.i.h.bf16 %v1889_v60 }
 0x441   :  { %1799 = vmatprep.subr.bf16.mxu0 %v1892_v0  ;;  %1778 = vmatprep.subr.bf16.mxu1 %v1892_v0 }
 0x442   :  { %v1779_v7 = vpack.c.bf16 %v1890_v6, %v1885_v62  ;;  %v1803_v10 = vpack.c.bf16 %v1891_v1, %v1886_v8 }
 0x444   :  { %1801 = vmatpush3.bf16.msra.mxu0 %v1800_v63  ;;  %1780 = vmatpush3.bf16.msra.mxu1 %v1779_v7 }
 0x445   :  { %1802 = vmatprep.subr.bf16.mxu0 %v1892_v0  ;;  %v1171_v0 = vrot.slane %v1157_v19, %v2048_v27 }
 0x447   :  { %v1179_v21 = vrot.slane %v1171_v0, %v2095_v48 }
 0x448   :  { %1804 = vmatpush3.bf16.msra.mxu0 %v1803_v10 }
 0x4fe   :  { %v1611_v12 = vpop.f32.mrb[6].mxu0 }
 0x4ff   :  { %v1144_v13 = vadd.f32 %v1611_v12, %v1424_v11  ;;  %v1138_v14 = vpop.f32.mrb[7].mxu0 }
 0x500   :  { %v1139_v15 = vadd.f32 %v1424_v11, %v1138_v14 }
 0x501   :  { %v1148_v16 = vmax.f32 %v1144_v13, 0.0 }
 0x502   :  { %v1147_v17 = vmax.f32 %v1139_v15, 0.0 }
 0x503   :  { %1680 = vmatmul.mubr.f32.vlgmr.msra.gmra.mrb[8].mxu0 %v1148_v16 }
 0x504   :  { %1645 = vmatmul.mubr.f32.vlgmr.msra.gmra.mrb[12].mxu1 %v1147_v17 }
 0x5d6   :  { %v1318_v2 = vpop.f32.mrb[8].mxu0 }
 0x5d7   :  { %v1319_v23 = vadd.f32 %v1318_v2, %v1179_v21  ;;  %v1248_v24 = vpop.f32.mrb[12].mxu1  ;;  %v1681_v25 = vpop.f32.mrb[9].mxu0 }
 0x5d8   :  { %v1249_v26 = vadd.f32 %v1248_v24, %v1175_v22  ;;  %v1646_v28 = vpop.f32.mrb[13].mxu1 }
 0x5d9   :  { %v1323_v29 = vmax.f32 %v1319_v23, 0.0 }
 0x5da   :  { %v1322_v30 = vmax.f32 %v1249_v26, 0.0 }
 0x5db   :  { %v1327_v31 = vrot.slane %v1323_v29, 1  ;;  %v1335_v9 = vrot.slane %v1323_v29, 2  ;;  %v1343_v48 = vrot.slane %v1323_v29, 3  ;;  %v1351_v33 = vrot.slane %v1323_v29, 4 }
 0x5dc   :  { %v1326_v32 = vrot.slane %v1322_v30, 1  ;;  %v1334_v27 = vrot.slane %v1322_v30, 2  ;;  %v1342_v5 = vrot.slane %v1322_v30, 3  ;;  %v1350_v34 = vrot.slane %v1322_v30, 4 }
 0x5dd   :  { %1330 = vrot.lane.b32.xlu1 %v1327_v31, %s1899_s6  ;;  %v1359_v35 = vrot.slane %v1323_v29, 5  ;;  %v1358_v36 = vrot.slane %v1322_v30, 5  ;;  %v1367_v37 = vrot.slane %v1323_v29, 6  ;;  %v1366_v38 = vrot.slane %v1322_v30, 6 }
 0x5de   :  { %1328 = vrot.lane.b32.xlu0 %v1326_v32, %s1899_s6  ;;  %v1375_v39 = vrot.slane %v1323_v29, 7  ;;  %v1374_v40 = vrot.slane %v1322_v30, 7 }
 0x5e1   :  { %1338 = vrot.lane.b32.xlu1 %v1335_v9, %s1901_s15 }
 0x5e2   :  { %1336 = vrot.lane.b32.xlu0 %v1334_v27, %s1901_s15 }
 0x5e5   :  { %1346 = vrot.lane.b32.xlu1 %v1343_v48, %s1903_s16 }
 0x5e6   :  { %1344 = vrot.lane.b32.xlu0 %v1342_v5, %s1903_s16 }
 0x5e9   :  { %1354 = vrot.lane.b32.xlu1 %v1351_v33, %s1908_s2 }
 0x5ea   :  { %1352 = vrot.lane.b32.xlu0 %v1350_v34, %s1908_s2 }
 0x5ed   :  { %1362 = vrot.lane.b32.xlu1 %v1359_v35, %s1906_s13 }
 0x5ee   :  { %1360 = vrot.lane.b32.xlu0 %v1358_v36, %s1906_s13 }
 0x5f1   :  { %1370 = vrot.lane.b32.xlu1 %v1367_v37, %s1907_s29 }
 0x5f2   :  { %1368 = vrot.lane.b32.xlu0 %v1366_v38, %s1907_s29 }
 0x5f5   :  { %1378 = vrot.lane.b32.xlu1 %v1375_v39, %s1905_s10 }
 0x5f6   :  { %1376 = vrot.lane.b32.xlu0 %v1374_v40, %s1905_s10 }
 0x64f   :  { %v1331_v41 = vpop.permute.xlu1 %1330 }
 0x650   :  { %v1329_v42 = vpop.permute.xlu0 %1328  ;;  %v1383_v51 = vsel %vm404_vm7, %v1323_v29, %v1331_v41 }
 0x651   :  { %v1382_v52 = vsel %vm404_vm7, %v1322_v30, %v1329_v42 }
 0x653   :  { %v1339_v4 = vpop.permute.xlu1 %1338 }
 0x654   :  { %v1337_v43 = vpop.permute.xlu0 %1336  ;;  %v1385_v53 = vsel %vm311_vm6, %v1383_v51, %v1339_v4 }
 0x655   :  { %v1384_v55 = vsel %vm311_vm6, %v1382_v52, %v1337_v43 }
 0x657   :  { %v1347_v44 = vpop.permute.xlu1 %1346 }
 0x658   :  { %v1345_v45 = vpop.permute.xlu0 %1344  ;;  %v1387_v56 = vsel %vm907_vm14, %v1385_v53, %v1347_v44 }
 0x659   :  { %v1386_v57 = vsel %vm907_vm14, %v1384_v55, %v1345_v45 }
 0x65b   :  { %v1355_v46 = vpop.permute.xlu1 %1354 }
 0x65c   :  { %v1353_v47 = vpop.permute.xlu0 %1352  ;;  %v1389_v58 = vsel %vm87_vm5, %v1387_v56, %v1355_v46 }
 0x65d   :  { %v1388_v59 = vsel %vm87_vm5, %v1386_v57, %v1353_v47 }
 0x65f   :  { %v1363_v49 = vpop.permute.xlu1 %1362 }
 0x660   :  { %v1361_v50 = vpop.permute.xlu0 %1360  ;;  %v1392_v60 = vsel %vm1390_vm0, %v1389_v58, %v1363_v49 }
 0x661   :  { %v1391_v61 = vsel %vm1390_vm0, %v1388_v59, %v1361_v50 }
 0x663   :  { %v1371_v54 = vpop.permute.xlu1 %1370 }
 0x664   :  { %v1369_v3 = vpop.permute.xlu0 %1368  ;;  %v1395_v62 = vsel %vm1393_vm1, %v1392_v60, %v1371_v54 }
 0x665   :  { %v1394_v63 = vsel %vm1393_vm1, %v1391_v61, %v1369_v3 }
 0x667   :  { %v1379_v6 = vpop.permute.xlu1 %1378 }
 0x668   :  { %v1398_v1 = vsel %vm1396_vm2, %v1395_v62, %v1379_v6  ;;  %v1377_v7 = vpop.permute.xlu0 %1376 }
 0x669   :  { %1400 = vst [vmem:[%s2384_s17 + $0x1] sm:$0x1] %v1398_v1  ;;  %v1397_v8 = vsel %vm1396_vm2, %v1394_v63, %v1377_v7 }
 0x66a   :  { %1399 = vst [vmem:[%s2384_s17] sm:$0x1] %v1397_v8 }

</bundles_post_ra>
